<compile_context>
chip_gen: v5e
topology: v5e:2x2
jax: 0.10.0
libtpu: 0.0.40
codegen_flags: <defaults>
</compile_context>

<pallas_src>
import jax
import jax.numpy as jnp
from jax.experimental import pallas as pl
from jax.experimental.pallas import tpu as pltpu

# ---------------- small synthetic config (mirrors 256/224/16/16/1024 setup) ----------------
STACK_SIZE = 8      # real: 16 (step_size == stack_size, non-overlapping stacks)
MIN_SIDE = 16       # real: PRE_CENTRAL_CROP_MIN_SIDE_SIZE = 256
CROP = 8            # real: CENTRAL_CROP_MIN_SIDE_SIZE = 224
RGB_C = 3
FLOW_C = 2
CONV_K = 3
CONV_STRIDE = 2
CONV_PAD = 1
CONV_OUT = 32       # real I3D stem: 64
FEAT_DIM = 64       # real I3D feature dim: 1024

# MXU / lane-aligned padded sizes (zero padding -> numerically exact).
N_PAD = 128         # conv output channels (32 -> 128), lane-dense intermediates
F_PAD = 128         # feature dim (64 -> 128), lane-dense output

_LANES = 128
_BF16_SUBLANES = 16          # bf16 native sublane tile
_MAX_ROW_TILE = 1024         # elementwise row tile (raised from 512 per review)
_HEAD_TM = 1024              # head M-tile (rows of im2col patches per grid step)
_VMEM_LIMIT = 32 * 1024 * 1024   # explicit scoped-VMEM budget (safe on v5e/v6e/v7x)


def _round_up(a, b):
    return -(-a // b) * b


# ============================== Pallas kernels ==============================

def _scale_rgb_kernel(x_ref, o_ref):
    # ScaleTo1_1: x in [0, 255] -> [-1, 1].  bf16 in / bf16 out, f32 compute.
    x = x_ref[...].astype(jnp.float32)
    o_ref[...] = (x * (2.0 / 255.0) - 1.0).astype(o_ref.dtype)


def _flow_transform_kernel(x_ref, o_ref):
    # Clamp(-20, 20) -> ToUInt8 (truncating cast of (f+20)*255/40) -> ScaleTo1_1
    f = jnp.clip(x_ref[...].astype(jnp.float32), -20.0, 20.0)
    u8 = jnp.floor((f + 20.0) * (255.0 / 40.0))   # values >= 0 so floor == trunc-to-zero
    o_ref[...] = (u8 * (2.0 / 255.0) - 1.0).astype(o_ref.dtype)


# ============================== kernel wrappers ==============================

def _apply_elementwise(kernel, x):
    """Run an elementwise kernel on a lane-dense (rows, 128) bf16 view of x (all videos)."""
    shape = x.shape
    flat = x.astype(jnp.bfloat16).reshape(-1)
    n = flat.shape[0]
    rows = _round_up(-(-n // _LANES), _BF16_SUBLANES)
    tile = min(rows, _MAX_ROW_TILE)
    rows = _round_up(rows, tile)
    flat = jnp.pad(flat, (0, rows * _LANES - n))
    x2d = flat.reshape(rows, _LANES)
    out = pl.pallas_call(
        kernel,
        out_shape=jax.ShapeDtypeStruct((rows, _LANES), jnp.bfloat16),
        grid=(rows // tile,),
        in_specs=[pl.BlockSpec((tile, _LANES), lambda i: (i, 0))],
        out_specs=pl.BlockSpec((tile, _LANES), lambda i: (i, 0)),
        compiler_params=pltpu.CompilerParams(
            dimension_semantics=("parallel",),
            vmem_limit_bytes=_VMEM_LIMIT),
    )(x2d)
    return out.reshape(-1)[:n].reshape(shape)


def _i3d_head(patches, wc, bc, wf, bf):
    """Fused I3D(features=True) head, tiled over M.

    patches : (V, M, k_in) bf16 im2col patches (k_in = k^3 * Cin, NOT padded to 128)
    wc      : (k_in, N_PAD) bf16 conv weight     bc : (1, N_PAD) f32 conv bias
    wf      : (N_PAD, F_PAD) f32 fc weight       bf : (1, F_PAD) f32 fc bias
    returns : (V, F_PAD) f32 features
    """
    V, M, k_in = patches.shape
    Np = wc.shape[1]
    Fp = wf.shape[1]

    tm = min(_HEAD_TM, _round_up(M, _BF16_SUBLANES))
    m_padded = _round_up(M, tm)
    if m_padded != M:
        patches = jnp.pad(patches, ((0, 0), (0, m_padded - M), (0, 0)))
    num_m = m_padded // tm
    mask_rows = (m_padded != M)   # only the last tile can contain padded rows

    def kernel(x_ref, wc_ref, bc_ref, wf_ref, bf_ref, o_ref, acc_ref):
        m = pl.program_id(1)

        @pl.when(m == 0)
        def _():
            acc_ref[...] = jnp.zeros_like(acc_ref)

        a = x_ref[0]                                                      # (tm, k_in) bf16
        h = jnp.dot(a, wc_ref[...], preferred_element_type=jnp.float32)  # (tm, Np) f32, MXU
        h = jnp.maximum(h + bc_ref[...], 0.0)
        if mask_rows:
            # padded rows would contribute ReLU(bias) != 0 -> mask them out of the sum
            row = jax.lax.broadcasted_iota(jnp.int32, (tm, 1), 0)
            h = jnp.where(row < (M - m * tm), h, 0.0)
        acc_ref[...] += jnp.sum(h, axis=0, keepdims=True)                 # running pooled sum

        @pl.when(m == num_m - 1)
        def _():
            pooled = acc_ref[...] * (1.0 / M)                             # true-M mean, f32
            feat = jnp.dot(pooled, wf_ref[...],
                           preferred_element_type=jnp.float32) + bf_ref[...]
            o_ref[0] = feat

    out = pl.pallas_call(
        kernel,
        out_shape=jax.ShapeDtypeStruct((V, 1, Fp), jnp.float32),
        grid=(V, num_m),
        in_specs=[
            pl.BlockSpec((1, tm, k_in), lambda v, m: (v, m, 0)),   # last dim = full extent
            pl.BlockSpec((k_in, Np), lambda v, m: (0, 0)),
            pl.BlockSpec((1, Np), lambda v, m: (0, 0)),
            pl.BlockSpec((Np, Fp), lambda v, m: (0, 0)),
            pl.BlockSpec((1, Fp), lambda v, m: (0, 0)),
        ],
        out_specs=pl.BlockSpec((1, 1, Fp), lambda v, m: (v, 0, 0)),
        scratch_shapes=[pltpu.VMEM((1, Np), jnp.float32)],
        compiler_params=pltpu.CompilerParams(
            dimension_semantics=("parallel", "arbitrary"),
            vmem_limit_bytes=_VMEM_LIMIT),
    )(patches, wc, bc, wf, bf)
    return out[:, 0, :]


# ============================== glue (plain JAX, traced under jit) ==============================

def _im2col_3d(x, k, stride, pad):
    """x: (V, T, H, W, C) -> patches (V, To*Ho*Wo, k*k*k*C). Zero pad is applied to the
    already-transformed tensor (matches conv zero padding in the reference model)."""
    x = jnp.pad(x, ((0, 0), (pad, pad), (pad, pad), (pad, pad), (0, 0)))
    V, T, H, W, C = x.shape
    To = (T - k) // stride + 1
    Ho = (H - k) // stride + 1
    Wo = (W - k) // stride + 1
    patches = []
    for dt in range(k):
        for dh in range(k):
            for dw in range(k):
                patches.append(
                    x[:, dt:dt + stride * To:stride,
                         dh:dh + stride * Ho:stride,
                         dw:dw + stride * Wo:stride, :])
    p = jnp.stack(patches, axis=-2)                    # (V, To, Ho, Wo, k^3, C)
    return p.reshape(V, To * Ho * Wo, k * k * k * C)


def _forward_impl(frames, params):
    """frames: (V, STACK_SIZE+1, H, W, 3) uint8 in [0, 255]. Fully batched over videos."""
    off = (MIN_SIDE - CROP) // 2

    rgb_stack = frames[:, :-1]                                        # (V, T, H, W, 3) uint8
    # TODO(synk): PWCNet optical flow replaced by a finite-difference 2-channel proxy.
    frames_bf = frames.astype(jnp.bfloat16)                           # 0..255 exact in bf16
    diff = jnp.mean(frames_bf[:, 1:] - frames_bf[:, :-1], axis=-1, keepdims=True)
    flow = jnp.concatenate([diff, -0.5 * diff], axis=-1)              # (V, T, H, W, 2) bf16

    # TensorCenterCrop(central_crop_size)
    rgb_c = rgb_stack[:, :, off:off + CROP, off:off + CROP, :]
    flow_c = flow[:, :, off:off + CROP, off:off + CROP, :]

    # i3d_transforms (elementwise) — one lane-dense bf16 Pallas call per stream, all videos.
    stream_in = {
        'rgb': _apply_elementwise(_scale_rgb_kernel, rgb_c),
        'flow': _apply_elementwise(_flow_transform_kernel, flow_c),
    }

    feats = {}
    for stream, x in stream_in.items():
        wc, bc, wf, bf = params[stream]
        patches = _im2col_3d(x, CONV_K, CONV_STRIDE, CONV_PAD)        # (V, M, k_in) bf16
        out = _i3d_head(patches, wc.astype(jnp.bfloat16), bc, wf, bf)  # (V, F_PAD) f32
        feats[stream] = out[:, :FEAT_DIM]
    return feats


_forward_jit = jax.jit(_forward_impl)


def _init_stream_params(keys, k_in):
    assert CONV_OUT <= N_PAD and FEAT_DIM <= F_PAD
    wc = 0.05 * jax.random.normal(keys[0], (k_in, CONV_OUT), jnp.float32)
    bc = 0.01 * jax.random.normal(keys[1], (1, CONV_OUT), jnp.float32)
    wf = 0.05 * jax.random.normal(keys[2], (CONV_OUT, FEAT_DIM), jnp.float32)
    bf = 0.01 * jax.random.normal(keys[3], (1, FEAT_DIM), jnp.float32)
    # Zero-pad only along N / F (lane-dense, exact); K stays at its natural size.
    wc_p = jnp.zeros((k_in, N_PAD), jnp.float32).at[:, :CONV_OUT].set(wc)
    bc_p = jnp.zeros((1, N_PAD), jnp.float32).at[:, :CONV_OUT].set(bc)
    wf_p = jnp.zeros((N_PAD, F_PAD), jnp.float32).at[:CONV_OUT, :FEAT_DIM].set(wf)
    bf_p = jnp.zeros((1, F_PAD), jnp.float32).at[:, :FEAT_DIM].set(bf)
    return (wc_p, bc_p, wf_p, bf_p)


class ExtractI3DPallas:
    """Pallas/JAX re-implementation of ExtractI3D.forward for synthetic videos."""

    def __init__(self, key):
        self.streams = ['rgb', 'flow']
        self.stack_size = STACK_SIZE
        self.step_size = STACK_SIZE
        self.central_crop_size = CROP
        keys = jax.random.split(key, 8)
        self.params = {
            'rgb': _init_stream_params(keys[0:4], CONV_K ** 3 * RGB_C),
            'flow': _init_stream_params(keys[4:8], CONV_K ** 3 * FLOW_C),
        }

    def forward(self, indices, videos):
        """indices: int array of video ids; videos: (V, STACK_SIZE+1, MIN_SIDE, MIN_SIDE, 3)
        uint8 frames (stands in for decoded + resized video frames). Frames stay uint8
        through host->device and gather; all float conversion happens on-device."""
        frames = jnp.take(jnp.asarray(videos, jnp.uint8), indices, axis=0)
        return _forward_jit(frames, self.params)


# ============================== main ==============================

if __name__ == "__main__":
    key = jax.random.PRNGKey(0)
    k_model, k_vid = jax.random.split(key)

    model = ExtractI3DPallas(k_model)

    num_videos = 2
    videos = jnp.round(jax.random.uniform(
        k_vid, (num_videos, STACK_SIZE + 1, MIN_SIDE, MIN_SIDE, RGB_C),
        dtype=jnp.float32, minval=0.0, maxval=255.0)).astype(jnp.uint8)
    indices = jnp.array([0, 1], dtype=jnp.int32)

    feats = model.forward(indices, videos)
    jax.block_until_ready(feats)

    assert feats['rgb'].shape == (num_videos, FEAT_DIM)
    assert feats['flow'].shape == (num_videos, FEAT_DIM)
    assert bool(jnp.all(jnp.isfinite(feats['rgb']))) and bool(jnp.all(jnp.isfinite(feats['flow'])))
    print("KERNEL_OK")
</pallas_src>

<mosaic_0001>
module attributes {stable_mosaic.version = 11 : i64} {
  func.func @_scale_rgb_kernel(%arg0: i32, %arg1: memref<32x128xbf16, #tpu.memory_space<vmem>>, %arg2: memref<32x128xbf16, #tpu.memory_space<vmem>>) attributes {dimension_semantics = [#tpu.dimension_semantics<parallel>], iteration_bounds = array<i64: 1>, scalar_prefetch = 0 : i64, scratch_operands = 0 : i64, tpu.core_type = #tpu.core_type<tc>, window_params = [{transform_indices = @transform_0, window_bounds = array<i64: 32, 128>}, {transform_indices = @transform_1, window_bounds = array<i64: 32, 128>}]} {
    %c0 = arith.constant 0 : index
    %c0_0 = arith.constant 0 : index
    %0 = vector.load %arg1[%c0, %c0_0] : memref<32x128xbf16, #tpu.memory_space<vmem>>, vector<32x128xbf16>
    %1 = arith.extf %0 : vector<32x128xbf16> to vector<32x128xf32>
    %cst = arith.constant 0.00784313772 : f32
    %2 = vector.broadcast %cst : f32 to vector<32x128xf32>
    %3 = arith.mulf %1, %2 : vector<32x128xf32>
    %cst_1 = arith.constant 1.000000e+00 : f32
    %4 = vector.broadcast %cst_1 : f32 to vector<32x128xf32>
    %5 = arith.subf %3, %4 : vector<32x128xf32>
    %6 = arith.truncf %5 : vector<32x128xf32> to vector<32x128xbf16>
    %c0_2 = arith.constant 0 : index
    %c0_3 = arith.constant 0 : index
    %7 = vector.load %arg2[%c0_2, %c0_3] : memref<32x128xbf16, #tpu.memory_space<vmem>>, vector<32x128xbf16>
    tpu.vector_store %arg2[%c0_2, %c0_3], %6 {strides = array<i32>} : memref<32x128xbf16, #tpu.memory_space<vmem>>, vector<32x128xbf16>,
    return
  }
  func.func @transform_0(%arg0: i32) -> (i32, i32) {
    %c0_i32 = arith.constant 0 : i32
    %c0_i32_0 = arith.constant 0 : i32
    return %arg0, %c0_i32 : i32, i32
  }
  func.func @transform_1(%arg0: i32) -> (i32, i32) {
    %c0_i32 = arith.constant 0 : i32
    %c0_i32_0 = arith.constant 0 : i32
    return %arg0, %c0_i32 : i32, i32
  }
}

module attributes {stable_mosaic.version = 11 : i64} {
  func.func @kernel(%arg0: i32, %arg1: i32, %arg2: memref<1x64x81xbf16, #tpu.memory_space<vmem>>, %arg3: memref<81x128xbf16, #tpu.memory_space<vmem>>, %arg4: memref<1x128xf32, #tpu.memory_space<vmem>>, %arg5: memref<128x128xf32, #tpu.memory_space<vmem>>, %arg6: memref<1x128xf32, #tpu.memory_space<vmem>>, %arg7: memref<1x1x128xf32, #tpu.memory_space<vmem>>, %arg8: memref<1x128xf32, #tpu.memory_space<vmem>>) attributes {dimension_semantics = [#tpu.dimension_semantics<parallel>, #tpu.dimension_semantics<arbitrary>], iteration_bounds = array<i64: 2, 1>, scalar_prefetch = 0 : i64, scratch_operands = 1 : i64, tpu.core_type = #tpu.core_type<tc>, window_params = [{transform_indices = @transform_0, window_bounds = array<i64: 1, 64, 81>}, {pipeline_mode = #tpu.pipeline_mode<synchronous>, transform_indices = @transform_1, window_bounds = array<i64: 81, 128>}, {pipeline_mode = #tpu.pipeline_mode<synchronous>, transform_indices = @transform_2, window_bounds = array<i64: 1, 128>}, {pipeline_mode = #tpu.pipeline_mode<synchronous>, transform_indices = @transform_3, window_bounds = array<i64: 128, 128>}, {pipeline_mode = #tpu.pipeline_mode<synchronous>, transform_indices = @transform_4, window_bounds = array<i64: 1, 128>}, {transform_indices = @transform_5, window_bounds = array<i64: 1, 1, 128>}]} {
    %c0_i32 = arith.constant 0 : i32
    %0 = arith.cmpi eq, %arg1, %c0_i32 : i32
    %1 = arith.extui %0 : i1 to i32
    %c0_i32_0 = arith.constant 0 : i32
    %2 = arith.cmpi ne, %1, %c0_i32_0 : i32
    scf.if %2 {
      %cst_15 = arith.constant 0.000000e+00 : f32
      %20 = vector.broadcast %cst_15 : f32 to vector<1x128xf32>
      %c0_16 = arith.constant 0 : index
      %c0_17 = arith.constant 0 : index
      %21 = vector.load %arg8[%c0_16, %c0_17] : memref<1x128xf32, #tpu.memory_space<vmem>>, vector<1x128xf32>
      tpu.vector_store %arg8[%c0_16, %c0_17], %20 {strides = array<i32>} : memref<1x128xf32, #tpu.memory_space<vmem>>, vector<1x128xf32>,
    } else {
    }
    %c0 = arith.constant 0 : index
    %c0_1 = arith.constant 0 : index
    %c0_2 = arith.constant 0 : index
    %3 = vector.load %arg2[%c0, %c0_1, %c0_2] : memref<1x64x81xbf16, #tpu.memory_space<vmem>>, vector<1x64x81xbf16>
    %4 = vector.shape_cast %3 : vector<1x64x81xbf16> to vector<64x81xbf16>
    %c0_3 = arith.constant 0 : index
    %c0_4 = arith.constant 0 : index
    %5 = vector.load %arg3[%c0_3, %c0_4] : memref<81x128xbf16, #tpu.memory_space<vmem>>, vector<81x128xbf16>
    %cst = arith.constant dense<0.000000e+00> : vector<64x128xf32>
    %6 = tpu.matmul %4, %5, %cst {dimension_numbers = #tpu.dot_dimension_numbers<[1], [0], [0], [1], [0, 0, 1, 1], [], []>} : vector<64x81xbf16>, vector<81x128xbf16>, vector<64x128xf32> -> vector<64x128xf32>
    %c0_5 = arith.constant 0 : index
    %c0_6 = arith.constant 0 : index
    %7 = vector.load %arg4[%c0_5, %c0_6] : memref<1x128xf32, #tpu.memory_space<vmem>>, vector<1x128xf32>
    %8 = vector.broadcast %7 : vector<1x128xf32> to vector<64x128xf32>
    %9 = arith.addf %6, %8 : vector<64x128xf32>
    %cst_7 = arith.constant 0.000000e+00 : f32
    %10 = vector.broadcast %cst_7 : f32 to vector<64x128xf32>
    %11 = arith.maximumf %9, %10 : vector<64x128xf32>
    %c0_8 = arith.constant 0 : index
    %c0_9 = arith.constant 0 : index
    %12 = vector.load %arg8[%c0_8, %c0_9] : memref<1x128xf32, #tpu.memory_space<vmem>>, vector<1x128xf32>
    %cst_10 = arith.constant dense<0.000000e+00> : vector<128xf32>
    %13 = vector.multi_reduction <add>, %11, %cst_10 [0] : vector<64x128xf32> to vector<128xf32>
    %14 = vector.shape_cast %13 : vector<128xf32> to vector<1x128xf32>
    %15 = arith.addf %12, %14 : vector<1x128xf32>
    %c0_11 = arith.constant 0 : index
    %c0_12 = arith.constant 0 : index
    %16 = vector.load %arg8[%c0_11, %c0_12] : memref<1x128xf32, #tpu.memory_space<vmem>>, vector<1x128xf32>
    tpu.vector_store %arg8[%c0_11, %c0_12], %15 {strides = array<i32>} : memref<1x128xf32, #tpu.memory_space<vmem>>, vector<1x128xf32>,
    %c0_i32_13 = arith.constant 0 : i32
    %17 = arith.cmpi eq, %arg1, %c0_i32_13 : i32
    %18 = arith.extui %17 : i1 to i32
    %c0_i32_14 = arith.constant 0 : i32
    %19 = arith.cmpi ne, %18, %c0_i32_14 : i32
    scf.if %19 {
      %c0_15 = arith.constant 0 : index
      %c0_16 = arith.constant 0 : index
      %20 = vector.load %arg8[%c0_15, %c0_16] : memref<1x128xf32, #tpu.memory_space<vmem>>, vector<1x128xf32>
      %cst_17 = arith.constant 1.562500e-02 : f32
      %21 = vector.broadcast %cst_17 : f32 to vector<1x128xf32>
      %22 = arith.mulf %20, %21 : vector<1x128xf32>
      %c0_18 = arith.constant 0 : index
      %c0_19 = arith.constant 0 : index
      %23 = vector.load %arg5[%c0_18, %c0_19] : memref<128x128xf32, #tpu.memory_space<vmem>>, vector<128x128xf32>
      %cst_20 = arith.constant dense<0.000000e+00> : vector<1x128xf32>
      %24 = tpu.matmul %22, %23, %cst_20 {dimension_numbers = #tpu.dot_dimension_numbers<[1], [0], [0], [1], [0, 0, 1, 1], [], []>} : vector<1x128xf32>, vector<128x128xf32>, vector<1x128xf32> -> vector<1x128xf32>
      %c0_21 = arith.constant 0 : index
      %c0_22 = arith.constant 0 : index
      %25 = vector.load %arg6[%c0_21, %c0_22] : memref<1x128xf32, #tpu.memory_space<vmem>>, vector<1x128xf32>
      %26 = arith.addf %24, %25 : vector<1x128xf32>
      %c0_23 = arith.constant 0 : index
      %c0_24 = arith.constant 0 : index
      %c0_25 = arith.constant 0 : index
      %27 = vector.load %arg7[%c0_23, %c0_24, %c0_25] : memref<1x1x128xf32, #tpu.memory_space<vmem>>, vector<1x1x128xf32>
      %28 = vector.shape_cast %27 : vector<1x1x128xf32> to vector<1x128xf32>
      %29 = vector.shape_cast %26 : vector<1x128xf32> to vector<1x1x128xf32>
      tpu.vector_store %arg7[%c0_23, %c0_24, %c0_25], %29 {strides = array<i32>} : memref<1x1x128xf32, #tpu.memory_space<vmem>>, vector<1x1x128xf32>,
    } else {
    }
    return
  }
  func.func @transform_0(%arg0: i32, %arg1: i32) -> (i32, i32, i32) {
    %c0_i32 = arith.constant 0 : i32
    %c0_i32_0 = arith.constant 0 : i32
    return %arg0, %arg1, %c0_i32 : i32, i32, i32
  }
  func.func @transform_1(%arg0: i32, %arg1: i32) -> (i32, i32) {
    %c0_i32 = arith.constant 0 : i32
    %c0_i32_0 = arith.constant 0 : i32
    %c0_i32_1 = arith.constant 0 : i32
    return %c0_i32, %c0_i32_0 : i32, i32
  }
  func.func @transform_2(%arg0: i32, %arg1: i32) -> (i32, i32) {
    %c0_i32 = arith.constant 0 : i32
    %c0_i32_0 = arith.constant 0 : i32
    %c0_i32_1 = arith.constant 0 : i32
    return %c0_i32, %c0_i32_0 : i32, i32
  }
  func.func @transform_3(%arg0: i32, %arg1: i32) -> (i32, i32) {
    %c0_i32 = arith.constant 0 : i32
    %c0_i32_0 = arith.constant 0 : i32
    %c0_i32_1 = arith.constant 0 : i32
    return %c0_i32, %c0_i32_0 : i32, i32
  }
  func.func @transform_4(%arg0: i32, %arg1: i32) -> (i32, i32) {
    %c0_i32 = arith.constant 0 : i32
    %c0_i32_0 = arith.constant 0 : i32
    %c0_i32_1 = arith.constant 0 : i32
    return %c0_i32, %c0_i32_0 : i32, i32
  }
  func.func @transform_5(%arg0: i32, %arg1: i32) -> (i32, i32, i32) {
    %c0_i32 = arith.constant 0 : i32
    %c0_i32_0 = arith.constant 0 : i32
    %c0_i32_1 = arith.constant 0 : i32
    return %arg0, %c0_i32, %c0_i32_0 : i32, i32, i32
  }
}

module attributes {stable_mosaic.version = 11 : i64} {
  func.func @_flow_transform_kernel(%arg0: i32, %arg1: memref<16x128xbf16, #tpu.memory_space<vmem>>, %arg2: memref<16x128xbf16, #tpu.memory_space<vmem>>) attributes {dimension_semantics = [#tpu.dimension_semantics<parallel>], iteration_bounds = array<i64: 1>, scalar_prefetch = 0 : i64, scratch_operands = 0 : i64, tpu.core_type = #tpu.core_type<tc>, window_params = [{transform_indices = @transform_0, window_bounds = array<i64: 16, 128>}, {transform_indices = @transform_1, window_bounds = array<i64: 16, 128>}]} {
    %c0 = arith.constant 0 : index
    %c0_0 = arith.constant 0 : index
    %0 = vector.load %arg1[%c0, %c0_0] : memref<16x128xbf16, #tpu.memory_space<vmem>>, vector<16x128xbf16>
    %1 = arith.extf %0 : vector<16x128xbf16> to vector<16x128xf32>
    %cst = arith.constant -2.000000e+01 : f32
    %cst_1 = arith.constant 2.000000e+01 : f32
    %2 = vector.broadcast %cst : f32 to vector<16x128xf32>
    %3 = arith.maximumf %2, %1 : vector<16x128xf32>
    %4 = vector.broadcast %cst_1 : f32 to vector<16x128xf32>
    %5 = arith.minimumf %4, %3 : vector<16x128xf32>
    %cst_2 = arith.constant 2.000000e+01 : f32
    %6 = vector.broadcast %cst_2 : f32 to vector<16x128xf32>
    %7 = arith.addf %5, %6 : vector<16x128xf32>
    %cst_3 = arith.constant 6.375000e+00 : f32
    %8 = vector.broadcast %cst_3 : f32 to vector<16x128xf32>
    %9 = arith.mulf %7, %8 : vector<16x128xf32>
    %10 = math.floor %9 : vector<16x128xf32>
    %cst_4 = arith.constant 0.00784313772 : f32
    %11 = vector.broadcast %cst_4 : f32 to vector<16x128xf32>
    %12 = arith.mulf %10, %11 : vector<16x128xf32>
    %cst_5 = arith.constant 1.000000e+00 : f32
    %13 = vector.broadcast %cst_5 : f32 to vector<16x128xf32>
    %14 = arith.subf %12, %13 : vector<16x128xf32>
    %15 = arith.truncf %14 : vector<16x128xf32> to vector<16x128xbf16>
    %c0_6 = arith.constant 0 : index
    %c0_7 = arith.constant 0 : index
    %16 = vector.load %arg2[%c0_6, %c0_7] : memref<16x128xbf16, #tpu.memory_space<vmem>>, vector<16x128xbf16>
    tpu.vector_store %arg2[%c0_6, %c0_7], %15 {strides = array<i32>} : memref<16x128xbf16, #tpu.memory_space<vmem>>, vector<16x128xbf16>,
    return
  }
  func.func @transform_0(%arg0: i32) -> (i32, i32) {
    %c0_i32 = arith.constant 0 : i32
    %c0_i32_0 = arith.constant 0 : i32
    return %arg0, %c0_i32 : i32, i32
  }
  func.func @transform_1(%arg0: i32) -> (i32, i32) {
    %c0_i32 = arith.constant 0 : i32
    %c0_i32_0 = arith.constant 0 : i32
    return %arg0, %c0_i32 : i32, i32
  }
}

module attributes {stable_mosaic.version = 11 : i64} {
  func.func @kernel(%arg0: i32, %arg1: i32, %arg2: memref<1x64x54xbf16, #tpu.memory_space<vmem>>, %arg3: memref<54x128xbf16, #tpu.memory_space<vmem>>, %arg4: memref<1x128xf32, #tpu.memory_space<vmem>>, %arg5: memref<128x128xf32, #tpu.memory_space<vmem>>, %arg6: memref<1x128xf32, #tpu.memory_space<vmem>>, %arg7: memref<1x1x128xf32, #tpu.memory_space<vmem>>, %arg8: memref<1x128xf32, #tpu.memory_space<vmem>>) attributes {dimension_semantics = [#tpu.dimension_semantics<parallel>, #tpu.dimension_semantics<arbitrary>], iteration_bounds = array<i64: 2, 1>, scalar_prefetch = 0 : i64, scratch_operands = 1 : i64, tpu.core_type = #tpu.core_type<tc>, window_params = [{transform_indices = @transform_0, window_bounds = array<i64: 1, 64, 54>}, {pipeline_mode = #tpu.pipeline_mode<synchronous>, transform_indices = @transform_1, window_bounds = array<i64: 54, 128>}, {pipeline_mode = #tpu.pipeline_mode<synchronous>, transform_indices = @transform_2, window_bounds = array<i64: 1, 128>}, {pipeline_mode = #tpu.pipeline_mode<synchronous>, transform_indices = @transform_3, window_bounds = array<i64: 128, 128>}, {pipeline_mode = #tpu.pipeline_mode<synchronous>, transform_indices = @transform_4, window_bounds = array<i64: 1, 128>}, {transform_indices = @transform_5, window_bounds = array<i64: 1, 1, 128>}]} {
    %c0_i32 = arith.constant 0 : i32
    %0 = arith.cmpi eq, %arg1, %c0_i32 : i32
    %1 = arith.extui %0 : i1 to i32
    %c0_i32_0 = arith.constant 0 : i32
    %2 = arith.cmpi ne, %1, %c0_i32_0 : i32
    scf.if %2 {
      %cst_15 = arith.constant 0.000000e+00 : f32
      %20 = vector.broadcast %cst_15 : f32 to vector<1x128xf32>
      %c0_16 = arith.constant 0 : index
      %c0_17 = arith.constant 0 : index
      %21 = vector.load %arg8[%c0_16, %c0_17] : memref<1x128xf32, #tpu.memory_space<vmem>>, vector<1x128xf32>
      tpu.vector_store %arg8[%c0_16, %c0_17], %20 {strides = array<i32>} : memref<1x128xf32, #tpu.memory_space<vmem>>, vector<1x128xf32>,
    } else {
    }
    %c0 = arith.constant 0 : index
    %c0_1 = arith.constant 0 : index
    %c0_2 = arith.constant 0 : index
    %3 = vector.load %arg2[%c0, %c0_1, %c0_2] : memref<1x64x54xbf16, #tpu.memory_space<vmem>>, vector<1x64x54xbf16>
    %4 = vector.shape_cast %3 : vector<1x64x54xbf16> to vector<64x54xbf16>
    %c0_3 = arith.constant 0 : index
    %c0_4 = arith.constant 0 : index
    %5 = vector.load %arg3[%c0_3, %c0_4] : memref<54x128xbf16, #tpu.memory_space<vmem>>, vector<54x128xbf16>
    %cst = arith.constant dense<0.000000e+00> : vector<64x128xf32>
    %6 = tpu.matmul %4, %5, %cst {dimension_numbers = #tpu.dot_dimension_numbers<[1], [0], [0], [1], [0, 0, 1, 1], [], []>} : vector<64x54xbf16>, vector<54x128xbf16>, vector<64x128xf32> -> vector<64x128xf32>
    %c0_5 = arith.constant 0 : index
    %c0_6 = arith.constant 0 : index
    %7 = vector.load %arg4[%c0_5, %c0_6] : memref<1x128xf32, #tpu.memory_space<vmem>>, vector<1x128xf32>
    %8 = vector.broadcast %7 : vector<1x128xf32> to vector<64x128xf32>
    %9 = arith.addf %6, %8 : vector<64x128xf32>
    %cst_7 = arith.constant 0.000000e+00 : f32
    %10 = vector.broadcast %cst_7 : f32 to vector<64x128xf32>
    %11 = arith.maximumf %9, %10 : vector<64x128xf32>
    %c0_8 = arith.constant 0 : index
    %c0_9 = arith.constant 0 : index
    %12 = vector.load %arg8[%c0_8, %c0_9] : memref<1x128xf32, #tpu.memory_space<vmem>>, vector<1x128xf32>
    %cst_10 = arith.constant dense<0.000000e+00> : vector<128xf32>
    %13 = vector.multi_reduction <add>, %11, %cst_10 [0] : vector<64x128xf32> to vector<128xf32>
    %14 = vector.shape_cast %13 : vector<128xf32> to vector<1x128xf32>
    %15 = arith.addf %12, %14 : vector<1x128xf32>
    %c0_11 = arith.constant 0 : index
    %c0_12 = arith.constant 0 : index
    %16 = vector.load %arg8[%c0_11, %c0_12] : memref<1x128xf32, #tpu.memory_space<vmem>>, vector<1x128xf32>
    tpu.vector_store %arg8[%c0_11, %c0_12], %15 {strides = array<i32>} : memref<1x128xf32, #tpu.memory_space<vmem>>, vector<1x128xf32>,
    %c0_i32_13 = arith.constant 0 : i32
    %17 = arith.cmpi eq, %arg1, %c0_i32_13 : i32
    %18 = arith.extui %17 : i1 to i32
    %c0_i32_14 = arith.constant 0 : i32
    %19 = arith.cmpi ne, %18, %c0_i32_14 : i32
    scf.if %19 {
      %c0_15 = arith.constant 0 : index
      %c0_16 = arith.constant 0 : index
      %20 = vector.load %arg8[%c0_15, %c0_16] : memref<1x128xf32, #tpu.memory_space<vmem>>, vector<1x128xf32>
      %cst_17 = arith.constant 1.562500e-02 : f32
      %21 = vector.broadcast %cst_17 : f32 to vector<1x128xf32>
      %22 = arith.mulf %20, %21 : vector<1x128xf32>
      %c0_18 = arith.constant 0 : index
      %c0_19 = arith.constant 0 : index
      %23 = vector.load %arg5[%c0_18, %c0_19] : memref<128x128xf32, #tpu.memory_space<vmem>>, vector<128x128xf32>
      %cst_20 = arith.constant dense<0.000000e+00> : vector<1x128xf32>
      %24 = tpu.matmul %22, %23, %cst_20 {dimension_numbers = #tpu.dot_dimension_numbers<[1], [0], [0], [1], [0, 0, 1, 1], [], []>} : vector<1x128xf32>, vector<128x128xf32>, vector<1x128xf32> -> vector<1x128xf32>
      %c0_21 = arith.constant 0 : index
      %c0_22 = arith.constant 0 : index
      %25 = vector.load %arg6[%c0_21, %c0_22] : memref<1x128xf32, #tpu.memory_space<vmem>>, vector<1x128xf32>
      %26 = arith.addf %24, %25 : vector<1x128xf32>
      %c0_23 = arith.constant 0 : index
      %c0_24 = arith.constant 0 : index
      %c0_25 = arith.constant 0 : index
      %27 = vector.load %arg7[%c0_23, %c0_24, %c0_25] : memref<1x1x128xf32, #tpu.memory_space<vmem>>, vector<1x1x128xf32>
      %28 = vector.shape_cast %27 : vector<1x1x128xf32> to vector<1x128xf32>
      %29 = vector.shape_cast %26 : vector<1x128xf32> to vector<1x1x128xf32>
      tpu.vector_store %arg7[%c0_23, %c0_24, %c0_25], %29 {strides = array<i32>} : memref<1x1x128xf32, #tpu.memory_space<vmem>>, vector<1x1x128xf32>,
    } else {
    }
    return
  }
  func.func @transform_0(%arg0: i32, %arg1: i32) -> (i32, i32, i32) {
    %c0_i32 = arith.constant 0 : i32
    %c0_i32_0 = arith.constant 0 : i32
    return %arg0, %arg1, %c0_i32 : i32, i32, i32
  }
  func.func @transform_1(%arg0: i32, %arg1: i32) -> (i32, i32) {
    %c0_i32 = arith.constant 0 : i32
    %c0_i32_0 = arith.constant 0 : i32
    %c0_i32_1 = arith.constant 0 : i32
    return %c0_i32, %c0_i32_0 : i32, i32
  }
  func.func @transform_2(%arg0: i32, %arg1: i32) -> (i32, i32) {
    %c0_i32 = arith.constant 0 : i32
    %c0_i32_0 = arith.constant 0 : i32
    %c0_i32_1 = arith.constant 0 : i32
    return %c0_i32, %c0_i32_0 : i32, i32
  }
  func.func @transform_3(%arg0: i32, %arg1: i32) -> (i32, i32) {
    %c0_i32 = arith.constant 0 : i32
    %c0_i32_0 = arith.constant 0 : i32
    %c0_i32_1 = arith.constant 0 : i32
    return %c0_i32, %c0_i32_0 : i32, i32
  }
  func.func @transform_4(%arg0: i32, %arg1: i32) -> (i32, i32) {
    %c0_i32 = arith.constant 0 : i32
    %c0_i32_0 = arith.constant 0 : i32
    %c0_i32_1 = arith.constant 0 : i32
    return %c0_i32, %c0_i32_0 : i32, i32
  }
  func.func @transform_5(%arg0: i32, %arg1: i32) -> (i32, i32, i32) {
    %c0_i32 = arith.constant 0 : i32
    %c0_i32_0 = arith.constant 0 : i32
    %c0_i32_1 = arith.constant 0 : i32
    return %arg0, %c0_i32, %c0_i32_0 : i32, i32, i32
  }
}

</mosaic_0001>

<bundles_post_ra>
// kernel: _forward_impl.4
= control target key start
LH: loop header
LB: loop body
LE: loop exit
PB: predicated region body
PF: predicated region fallthrough
CT: control target
= control target key end

     0   :  { %s82_s0 = inlined_call_operand.vmem [shape: bf16[32,128], index: 0, kind: input, shape index: {}]   ;;  %s83_s1 = inlined_call_operand.vmem [shape: bf16[32,128], index: 1, kind: output, shape index: {}]  }
   0x1   :  { %v41_v0 = vld [vmem:[%s82_s0] sm:$0xff]   ;;  %v58_v1 = vld [vmem:[%s82_s0 + $0x8] sm:$0xff]  }
   0x2   :  { %v42_v2 = vunpack.c.l.bf16 %v41_v0  ;;  %v43_v3 = vunpack.c.h.bf16 %v41_v0  ;;  %v46_v4 = vunpack.c.l.bf16 %v58_v1  ;;  %v47_v5 = vunpack.c.h.bf16 %v58_v1 }
   0x4   :  { %v16_v6 = vmul.f32 0.007843138, %v42_v2  ;;  %v17_v7 = vmul.f32 0.007843138, %v43_v3  ;;  %v18_v8 = vmul.f32 0.007843138, %v46_v4 }
   0x5   :  { %v19_v9 = vmul.f32 0.007843138, %v47_v5 }
   0x6   :  { %v36_v10 = vadd.f32 -1.0, %v16_v6  ;;  %v37_v11 = vadd.f32 -1.0, %v17_v7  ;;  %v38_v12 = vadd.f32 -1.0, %v18_v8 }
   0x7   :  { %v39_v13 = vadd.f32 -1.0, %v19_v9 }
   0x8   :  { %v51_v14 = vpack.c.bf16 %v37_v11, %v36_v10 }
   0x9   :  { %v56_v15 = vpack.c.bf16 %v39_v13, %v38_v12 }
   0xa   :  { %52 = vst [vmem:[%s83_s1] sm:$0xff] %v51_v14  }
   0xb   :  { %59 = vst [vmem:[%s83_s1 + $0x8] sm:$0xff] %v56_v15  }

// kernel: _forward_impl.6
= control target key start
LH: loop header
LB: loop body
LE: loop exit
PB: predicated region body
PF: predicated region fallthrough
CT: control target
= control target key end

     0   :  { %10 = vsyncpa [#allocation4], 0  ;;  %s939_s0 = inlined_call_operand.vmem [shape: bf16[2,64,81], index: 0, kind: input, shape index: {}]   ;;  %s940_s1 = inlined_call_operand.vmem [shape: bf16[81,128], index: 1, kind: input, shape index: {}]   ;;  %s941_s2 = inlined_call_operand.vmem [shape: f32[1,128], index: 2, kind: input, shape index: {}]   ;;  %s942_s3 = inlined_call_operand.vmem [shape: f32[128,128], index: 3, kind: input, shape index: {}]   ;;  %s943_s4 = inlined_call_operand.vmem [shape: f32[1,128], index: 4, kind: input, shape index: {}]   ;;  %s944_s5 = inlined_call_operand.hbm [shape: f32[2,1,128], index: 5, kind: output, shape index: {}]  }
   0x1   :  { %12 = vsyncpa [#allocation4 + $0x1], 0  ;;  %s770_s18 = smov 0   ;;  %s772_s19 = smov 0  }
   0x2   :  { %s774_s20 = smov 0   ;;  %s776_s21 = smov 0  }
   0x3   :  { %s778_s22 = smov 0   ;;  %s780_s23 = smov 0  }
   0x4 LB: > { %s529_s24 = sadd.s32 4294967295, %s736_s23   ;;  %s530_s25 = sadd.s32 4294967294, %s736_s23   ;;  %s736_s23 = sphi %s780_s23, %s18_s23   ;;  %s732_s22 = sphi %s778_s22, %s951_s22   ;;  %s728_s21 = sphi %s776_s21, %s950_s21   ;;  %s724_s20 = sphi %s774_s20, %s949_s20   ;;  %s720_s19 = sphi %s772_s19, %s948_s19   ;;  %s716_s18 = sphi %s770_s18, %s947_s18  }
   0x5   : > { %s30_s26 = sadd.s32 1, %s732_s22  ;;  %s149_s27 = sadd.s32 1, %s724_s20 }
   0x6   : > { %p32_p0 = scmp.ge.s32.totalorder %s30_s26, 2  ;;  %p159_p1 = scmp.ne.s32.totalorder %s724_s20, %s720_s19 }
   0x7   : > { %p160_p2 = scmp.eq.s32.totalorder %s529_s24, 1  ;;  %p165_p3 = scmp.ne.s32.totalorder %s720_s19, %s716_s18 }
   0x8   : > { %s953_s26 = smov (%p32_p0, %s30_s26), 0  ;;  %p166_p5 = scmp.eq.s32.totalorder %s530_s25, 1 }
   0x9   : > { %p810_p4 = por %p160_p2, %p159_p1  ;;  %s146_s29 = ssub.s32 %s732_s22, %s953_s26 }
   0xa   : > { %p533_p6 = scmp.ge.s32.totalorder %s736_s23, 1  ;;  %p147_p7 = scmp.eq.s32.totalorder %s146_s29, 0 }
   0xb   : > { %p817_p8 = por %p166_p5, %p165_p3  ;;  %p209_p9 = scmp.lt.s32.totalorder %s736_s23, 3 }
   0xc   : > { %s823_s6 = scalar_select %p147_p7, %s724_s20, %s149_s27  }
   0xd   : > { %p210_p10 = pnand %p533_p6, %p209_p9 }
   0xe   : > { %p241_p11 = scmp.lt.s32.totalorder (!%p210_p10), %s728_s21, 1  ;;  %s238_s13 = sand.u32 (!%p210_p10), 1, %s720_s19  }
   0xf   : > { %213 = sbr.rel (%p210_p10) target bundleno = 367 (0x16f), region = 40  ;;  %s456_s16 = scalar_lea.hbm (!%p210_p10), %s944_s5, %s728_s21 }
  0x10   : > { %s239_s25 = scalar_lea.vmem (!%p210_p10), [#allocation3], %s238_s13  ;;  %s460_s29 = sshll.u32 (!%p210_p10), %s456_s16, 4  ;;  %s461_s29 = int_to_ptr.hbm [resolvable:$true] %s460_s29 }
  0x11   : > { %s458_s27 = sshll.u32 (!%p210_p10), %s239_s25, 4  ;;  %s448_s7 = scalar_lea.sflag (!%p210_p10), [#allocation4], %s238_s13  ;;  %s459_s27 = int_to_ptr.vmem [resolvable:$true] %s458_s27 }
  0x12   : > { %s678_s11 = scalar_lea.hbm (!%p210_p10), %s944_s5, 2 }
  0x14   : > { %v274_v0 = vld [vmem:[%s940_s1 + $0x28] sm:$0x1]  ;;  %vm345_vm0 = vcmask 1040384   ;;  %v738_v2 = vmov 0   ;;  %v587_v6 = vld [vmem:[%s940_s1 + $0x20] sm:$0xff]  ;;  %v586_v7 = vld [vmem:[%s940_s1 + $0x18] sm:$0xff] }
  0x15   : > { %v320_v1 = vunpack.c.l.b16 %v274_v0  ;;  %v347_v3 = vsel %vm345_vm0, 65535, %v738_v2  ;;  %v585_v8 = vld [vmem:[%s940_s1 + $0x10] sm:$0xff]  ;;  %s242_s15 = scalar_select %p241_p11, %s728_s21, 1  ;;  %v584_v9 = vld [vmem:[%s940_s1 + $0x8] sm:$0xff]  ;;  %v583_v10 = vld [vmem:[%s940_s1] sm:$0xff]  ;;  %vm332_vm1 = vcmask 662528  }
  0x16   : > { %v739_v15 = vmov 0.0   ;;  %v424_v16 = vld [vmem:[%s942_s3 + $0x78] sm:$0xff]  ;;  %v423_v17 = vld [vmem:[%s942_s3 + $0x70] sm:$0xff]  ;;  %v422_v19 = vld [vmem:[%s942_s3 + $0x68] sm:$0xff] }
  0x17   : > { %v326_v4 = vpack.c.b16 %v320_v1, %v320_v1  ;;  %s578_s24 = sshll.u32 %s242_s15, 5  ;;  %255 = vst [vmem:[#allocation2] sm:$0x1] %v739_v15  ;;  %426 = vmatpush.msra.mxu1 %v424_v16  ;;  %v421_v20 = vld [vmem:[%s942_s3 + $0x60] sm:$0xff]  ;;  %v420_v22 = vld [vmem:[%s942_s3 + $0x58] sm:$0xff]  ;;  %v419_v26 = vld [vmem:[%s942_s3 + $0x50] sm:$0xff] }
  0x18   : > { %s248_s8 = scalar_lea.vmem %s939_s0, %s578_s24  ;;  %v657_v21 = vld [vmem:[%s941_s2] ss:$0 sm:$0xff]  ;;  %v418_v28 = vld [vmem:[%s942_s3 + $0x48] sm:$0xff]  ;;  %v416_v34 = vld [vmem:[%s942_s3 + $0x38] sm:$0xff] }
  0x19   : > { %v349_v5 = vand.u32 %v347_v3, %v326_v4  ;;  %v580_v11 = vld [vmem:[%s248_s8 + $0x8] sm:$0xff]  ;;  %v581_v12 = vld [vmem:[%s248_s8 + $0x10] sm:$0xff]  ;;  %v579_v13 = vld [vmem:[%s248_s8] sm:$0xff]  ;;  %427 = vmatpush.msra.mxu1 %v423_v17 }
  0x1a   : > { %v582_v14 = vld [vmem:[%s248_s8 + $0x18] sm:$0xff]  ;;  %v417_v32 = vld [vmem:[%s942_s3 + $0x40] sm:$0xff]  ;;  %v415_v40 = vld [vmem:[%s942_s3 + $0x30] sm:$0xff]  ;;  %s672_s8 = sshra.s32 %s461_s29, 4  ;;  %s673_s8 = int_to_ptr.hbm [resolvable:$true] %s672_s8 }
  0x1b   : > { %588 = vmatpush.bf16.msra.mxu2 %v349_v5  ;;  %589 = vmatpush.bf16.msra.mxu3 %v349_v5  ;;  %v414_v41 = vld [vmem:[%s942_s3 + $0x28] sm:$0xff]  ;;  %v413_v44 = vld [vmem:[%s942_s3 + $0x20] sm:$0xff]  ;;  %v412_v45 = vld [vmem:[%s942_s3 + $0x18] sm:$0xff]  ;;  %s674_s9 = scalar_lea.hbm %s673_s8, 1  ;;  %p679_p1 = scmp.lt.s32.totalorder %s673_s8, %s944_s5 }
  0x1c   : > { %353 = vmatpush.bf16.msra.mxu0 %v349_v5  ;;  %428 = vmatpush.msra.mxu1 %v422_v19  ;;  %v411_v47 = vld [vmem:[%s942_s3 + $0x10] sm:$0xff]  ;;  %v410_v50 = vld [vmem:[%s942_s3 + $0x8] sm:$0xff]  ;;  %v409_v54 = vld [vmem:[%s942_s3] sm:$0xff]  ;;  %p675_p12 = scmp.ne.s32.totalorder %s673_s8, %s674_s9  ;;  %p680_p2 = scmp.lt.s32.totalorder %s678_s11, %s674_s9 }
  0x1e   : > { %429 = vmatpush.msra.mxu1 %v421_v20  ;;  %v388_v5 = vld [vmem:[#allocation2] sm:$0x1]  ;;  %p676_p13 = pnand %p675_p12, %p810_p4  ;;  %p681_p3 = por %p680_p2, %p679_p1 }
  0x1f   : > { %590 = vmatpush.bf16.msra.mxu2 %v587_v6  ;;  %591 = vmatpush.bf16.msra.mxu3 %v587_v6 }
  0x20   : > { %354 = vmatpush.bf16.msra.mxu0 %v587_v6  ;;  %430 = vmatpush.msra.mxu1 %v420_v22  ;;  %p677_p0 = pneg %p676_p13 }
  0x22   : > { %431 = vmatpush.msra.mxu1 %v419_v26  ;;  %p682_p5 = pnand %p681_p3, %p677_p0 }
  0x23   : > { %592 = vmatpush.bf16.msra.mxu2 %v586_v7  ;;  %593 = vmatpush.bf16.msra.mxu3 %v586_v7 }
  0x24   : > { %355 = vmatpush.bf16.msra.mxu0 %v586_v7  ;;  %432 = vmatpush.msra.mxu1 %v418_v28 }
  0x26   : > { %433 = vmatpush.msra.mxu1 %v417_v32 }
  0x27   : > { %594 = vmatpush.bf16.msra.mxu2 %v585_v8  ;;  %595 = vmatpush.bf16.msra.mxu3 %v585_v8 }
  0x28   : > { %356 = vmatpush.bf16.msra.mxu0 %v585_v8  ;;  %434 = vmatpush.msra.mxu1 %v416_v34 }
  0x2a   : > { %435 = vmatpush.msra.mxu1 %v415_v40 }
  0x2b   : > { %596 = vmatpush.bf16.msra.mxu2 %v584_v9  ;;  %597 = vmatpush.bf16.msra.mxu3 %v584_v9 }
  0x2c   : > { %357 = vmatpush.bf16.msra.mxu0 %v584_v9  ;;  %436 = vmatpush.msra.mxu1 %v414_v41 }
  0x2e   : > { %437 = vmatpush.msra.mxu1 %v413_v44 }
  0x2f   : > { %598 = vmatpush.bf16.msra.mxu2 %v583_v10  ;;  %599 = vmatpush.bf16.msra.mxu3 %v583_v10 }
  0x30   : > { %358 = vmatpush.bf16.msra.mxu0 %v583_v10  ;;  %438 = vmatpush.msra.mxu1 %v412_v45  ;;  %v425_v10 = vld [vmem:[%s943_s4] sm:$0x1] }
  0x32   : > { %573 = vmatmul.msk.bf16.vlgmr.msra.gmra.mxu2 %vm332_vm1, %v580_v11  ;;  %574 = vmatmul.msk.bf16.vlgmr.msra.gmra.mxu3 %vm332_vm1, %v581_v12 }
  0x33   : > { %572 = vmatmul.msk.bf16.vlgmr.msra.gmra.mxu0 %vm332_vm1, %v579_v13  ;;  %439 = vmatpush.msra.mxu1 %v411_v47 }
  0x35   : > { %440 = vmatpush.msra.mxu1 %v410_v50 }
  0x37   : > { %441 = vmatpush.msra.mxu1 %v409_v54 }
  0x42   : > { %575 = vmatmul.msk.bf16.gmra.mxu3 %vm332_vm1, %v582_v14 }
  0xb0   : > { %v360_v18 = vpop.f32.mrf.mxu0 }
  0xb1   : > { %v361_v25 = vadd.f32 %v657_v21, %v360_v18 }
  0xb3   : > { %v380_v30 = vmax.f32 %v361_v25, 0.0 }
  0xb5   : > { %v365_v23 = vpop.f32.mrf.mxu2  ;;  %v370_v24 = vpop.f32.mrf.mxu3 }
  0xb6   : > { %v366_v31 = vadd.f32 %v657_v21, %v365_v23  ;;  %v371_v46 = vadd.f32 %v657_v21, %v370_v24 }
  0xb8   : > { %v362_v27 = vpop.f32.mrf.mxu0  ;;  %v382_v37 = vmax.f32 %v366_v31, 0.0  ;;  %v384_v51 = vmax.f32 %v371_v46, 0.0 }
  0xb9   : > { %v363_v29 = vadd.f32 %v657_v21, %v362_v27 }
  0xbb   : > { %v381_v33 = vmax.f32 %v363_v29, 0.0 }
  0xbd   : > { %v367_v35 = vpop.f32.mrf.mxu2  ;;  %v372_v36 = vpop.f32.mrf.mxu3  ;;  %v389_v38 = vadd.f32 %v381_v33, %v380_v30 }
  0xbe   : > { %v368_v39 = vadd.f32 %v657_v21, %v367_v35  ;;  %v373_v52 = vadd.f32 %v657_v21, %v372_v36 }
  0xbf   : > { %v390_v43 = vadd.f32 %v389_v38, %v382_v37 }
  0xc0   : > { %v383_v42 = vmax.f32 %v368_v39, 0.0  ;;  %v385_v56 = vmax.f32 %v373_v52, 0.0 }
  0xc2   : > { %v391_v49 = vadd.f32 %v390_v43, %v383_v42 }
  0xc4   : > { %v392_v55 = vadd.f32 %v391_v49, %v384_v51 }
  0xc5   : > { %v375_v48 = vpop.f32.mrf.mxu3 }
  0xc6   : > { %v376_v53 = vadd.f32 %v657_v21, %v375_v48  ;;  %v393_v59 = vadd.f32 %v392_v55, %v385_v56 }
  0xc8   : > { %v386_v57 = vmax.f32 %v376_v53, 0.0 }
  0xca   : > { %v394_v61 = vadd.f32 %v393_v59, %v386_v57 }
  0xcd   : > { %v377_v58 = vpop.f32.mrf.mxu3 }
  0xce   : > { %v378_v60 = vadd.f32 %v657_v21, %v377_v58 }
  0xd0   : > { %v387_v62 = vmax.f32 %v378_v60, 0.0 }
  0xd2   : > { %v395_v63 = vadd.f32 %v394_v61, %v387_v62 }
  0xd4   : > { %v396_v0 = vrot.slane %v395_v63, 4 }
  0xd6   : > { %v397_v1 = vadd.f32 %v396_v0, %v395_v63 }
  0xd8   : > { %v398_v2 = vrot.slane %v397_v1, 2 }
  0xda   : > { %v399_v3 = vadd.f32 %v398_v2, %v397_v1 }
  0xdc   : > { %v400_v4 = vrot.slane %v399_v3, 1 }
  0xde   : > { %v401_v6 = vadd.f32 %v400_v4, %v399_v3 }
  0xe0   : > { %v402_v7 = vadd.f32 %v401_v6, %v388_v5 }
  0xe2   : > { %403 = vst [vmem:[#allocation2] sm:$0x1] %v402_v7 }
  0xe9   : > { %v407_v8 = vld [vmem:[#allocation2] sm:$0x1] }
  0xea   : > { %v408_v9 = vmul.f32 0.015625, %v407_v8 }
  0xec   : > { %442 = vmatmul.f32.vlgmr.msra.gmra.mxu1 %v408_v9 }
 0x169   : > { %v443_v11 = vpop.f32.mrf.mxu1 }
 0x16a   : > { %v444_v12 = vadd.f32 %v443_v11, %v425_v10 }
 0x16c   : > { %446 = vst [vmem:[%s239_s25] sm:$0x1] %v444_v12 }
 0x16d   : > { %685 = shalt.err (!%p682_p5)
}
 0x16e   : > { %600 = dma.vmem_to_hbm [thread:$0]  (%p810_p4), %s459_s27, 16, %s461_s29, %s448_s7  }
 0x16f PF: > { %p606_p6 = scmp.ge.s32.totalorder %s736_s23, 2  ;;  %s472_s13 = sand.u32 1, %s716_s18  }
 0x170   : > { %s473_s15 = scalar_lea.sflag [#allocation4], %s472_s13 }
 0x171   : > { %p603_p7 = pnand %p606_p6, %p817_p8 }
 0x173   : > { %p604_p9 = pneg %p603_p7 }
 0x175   : > { %711 = dma.done.wait (%p604_p9), %s473_s15, 16  }
 0x176   : > { %713 = vsyncadd (%p604_p9), %s473_s15, 4294967280  ;;  %s18_s23 = sadd.s32 1, %s736_s23   ;;  %s947_s18 = smov %s720_s19 }
 0x177   : > { %p15_p10 = scmp.ge.s32.totalorder %s18_s23, 4   ;;  %s948_s19 = smov %s724_s20 }
 0x178   : > { %s949_s20 = smov %s823_s6  ;;  %s950_s21 = smov %s732_s22 }
 0x179   : > { %s951_s22 = smov %s953_s26  ;;  %17 = sbr.rel (!%p15_p10) target bundleno = 4 (0x4), region = 83 }
 0x17e   :  { %478 = vsyncpa [#allocation4], 1 }
 0x17f   :  { %480 = vsyncpa [#allocation4 + $0x1], 1 }

// kernel: _forward_impl.5
= control target key start
LH: loop header
LB: loop body
LE: loop exit
PB: predicated region body
PF: predicated region fallthrough
CT: control target
= control target key end

     0   :  { %s63_s0 = inlined_call_operand.vmem [shape: bf16[16,128], index: 0, kind: input, shape index: {}]   ;;  %s64_s1 = inlined_call_operand.vmem [shape: bf16[16,128], index: 1, kind: output, shape index: {}]  }
   0x1   :  { %v39_v0 = vld [vmem:[%s63_s0] sm:$0xff]  }
   0x2   :  { %v40_v1 = vunpack.c.l.bf16 %v39_v0  ;;  %v41_v2 = vunpack.c.h.bf16 %v39_v0 }
   0x4   :  { %v34_v3 = vclamps-f32 %v40_v1, 20.0  ;;  %v35_v4 = vclamps-f32 %v41_v2, 20.0 }
   0x6   :  { %v16_v5 = vadd.f32 20.0, %v34_v3  ;;  %v17_v6 = vadd.f32 20.0, %v35_v4 }
   0x8   :  { %v18_v7 = vmul.f32 6.375, %v16_v5  ;;  %v19_v8 = vmul.f32 6.375, %v17_v6 }
   0xa   :  { %v20_v9 = vfloor.f32 %v18_v7  ;;  %v21_v10 = vfloor.f32 %v19_v8 }
   0xc   :  { %v22_v11 = vmul.f32 0.007843138, %v20_v9  ;;  %v23_v12 = vmul.f32 0.007843138, %v21_v10 }
   0xe   :  { %v36_v13 = vadd.f32 -1.0, %v22_v11  ;;  %v37_v14 = vadd.f32 -1.0, %v23_v12 }
  0x10   :  { %v45_v15 = vpack.c.bf16 %v37_v14, %v36_v13 }
  0x12   :  { %46 = vst [vmem:[%s64_s1] sm:$0xff] %v45_v15  }

// kernel: _forward_impl.7
= control target key start
LH: loop header
LB: loop body
LE: loop exit
PB: predicated region body
PF: predicated region fallthrough
CT: control target
= control target key end

     0   :  { %10 = vsyncpa [#allocation4], 0  ;;  %s899_s0 = inlined_call_operand.vmem [shape: bf16[2,64,54], index: 0, kind: input, shape index: {}]   ;;  %s900_s1 = inlined_call_operand.vmem [shape: bf16[54,128], index: 1, kind: input, shape index: {}]   ;;  %s901_s2 = inlined_call_operand.vmem [shape: f32[1,128], index: 2, kind: input, shape index: {}]   ;;  %s902_s3 = inlined_call_operand.vmem [shape: f32[128,128], index: 3, kind: input, shape index: {}]   ;;  %s903_s4 = inlined_call_operand.vmem [shape: f32[1,128], index: 4, kind: input, shape index: {}]   ;;  %s904_s5 = inlined_call_operand.hbm [shape: f32[2,1,128], index: 5, kind: output, shape index: {}]  }
   0x1   :  { %12 = vsyncpa [#allocation4 + $0x1], 0  ;;  %s736_s18 = smov 0   ;;  %s738_s19 = smov 0  }
   0x2   :  { %s740_s20 = smov 0   ;;  %s742_s21 = smov 0  }
   0x3   :  { %s744_s22 = smov 0   ;;  %s746_s23 = smov 0  }
   0x4 LB: > { %s511_s24 = sadd.s32 4294967295, %s703_s23   ;;  %s512_s25 = sadd.s32 4294967294, %s703_s23   ;;  %s703_s23 = sphi %s746_s23, %s18_s23   ;;  %s699_s22 = sphi %s744_s22, %s911_s22   ;;  %s695_s21 = sphi %s742_s21, %s910_s21   ;;  %s691_s20 = sphi %s740_s20, %s909_s20   ;;  %s687_s19 = sphi %s738_s19, %s908_s19   ;;  %s683_s18 = sphi %s736_s18, %s907_s18  }
   0x5   : > { %s30_s26 = sadd.s32 1, %s699_s22  ;;  %s149_s27 = sadd.s32 1, %s691_s20 }
   0x6   : > { %p32_p0 = scmp.ge.s32.totalorder %s30_s26, 2  ;;  %p159_p1 = scmp.ne.s32.totalorder %s691_s20, %s687_s19 }
   0x7   : > { %p160_p2 = scmp.eq.s32.totalorder %s511_s24, 1  ;;  %p165_p3 = scmp.ne.s32.totalorder %s687_s19, %s683_s18 }
   0x8   : > { %s913_s26 = smov (%p32_p0, %s30_s26), 0  ;;  %p166_p5 = scmp.eq.s32.totalorder %s512_s25, 1 }
   0x9   : > { %p776_p4 = por %p160_p2, %p159_p1  ;;  %s146_s29 = ssub.s32 %s699_s22, %s913_s26 }
   0xa   : > { %p515_p6 = scmp.ge.s32.totalorder %s703_s23, 1  ;;  %p147_p7 = scmp.eq.s32.totalorder %s146_s29, 0 }
   0xb   : > { %p783_p8 = por %p166_p5, %p165_p3  ;;  %p209_p9 = scmp.lt.s32.totalorder %s703_s23, 3 }
   0xc   : > { %s789_s6 = scalar_select %p147_p7, %s691_s20, %s149_s27  }
   0xd   : > { %p210_p10 = pnand %p515_p6, %p209_p9 }
   0xe   : > { %p241_p11 = scmp.lt.s32.totalorder (!%p210_p10), %s695_s21, 1  ;;  %s238_s9 = sand.u32 (!%p210_p10), 1, %s687_s19  }
   0xf   : > { %213 = sbr.rel (%p210_p10) target bundleno = 362 (0x16a), region = 40  ;;  %s438_s12 = scalar_lea.hbm (!%p210_p10), %s904_s5, %s695_s21 }
  0x10   : > { %s239_s15 = scalar_lea.vmem (!%p210_p10), [#allocation3], %s238_s9  ;;  %s442_s17 = sshll.u32 (!%p210_p10), %s438_s12, 4  ;;  %s443_s17 = int_to_ptr.hbm [resolvable:$true] %s442_s17 }
  0x11   : > { %s440_s16 = sshll.u32 (!%p210_p10), %s239_s15, 4  ;;  %s430_s24 = scalar_lea.sflag (!%p210_p10), [#allocation4], %s238_s9  ;;  %s441_s16 = int_to_ptr.vmem [resolvable:$true] %s440_s16 }
  0x12   : > { %s645_s7 = scalar_lea.hbm (!%p210_p10), %s904_s5, 2 }
  0x14   : > { %v270_v0 = vld [vmem:[%s900_s1 + $0x18] sm:$0x7]  ;;  %vm329_vm0 = vcmask 1042432   ;;  %v559_v4 = vld [vmem:[%s900_s1 + $0x10] sm:$0xff]  ;;  %s242_s11 = scalar_select %p241_p11, %s695_s21, 1  ;;  %v558_v5 = vld [vmem:[%s900_s1 + $0x8] sm:$0xff] }
  0x15   : > { %v308_v1 = vunpack.c.l.b16 %v270_v0  ;;  %v557_v6 = vld [vmem:[%s900_s1] sm:$0xff]  ;;  %vm316_vm1 = vcmask 441344   ;;  %v705_v11 = vmov 0.0   ;;  %v406_v12 = vld [vmem:[%s902_s3 + $0x78] sm:$0xff]  ;;  %v405_v13 = vld [vmem:[%s902_s3 + $0x70] sm:$0xff] }
  0x16   : > { %s552_s14 = sshll.u32 %s242_s11, 5  ;;  %255 = vst [vmem:[#allocation2] sm:$0x1] %v705_v11  ;;  %408 = vmatpush.msra.mxu1 %v406_v12  ;;  %v404_v15 = vld [vmem:[%s902_s3 + $0x68] sm:$0xff]  ;;  %v403_v17 = vld [vmem:[%s902_s3 + $0x60] sm:$0xff]  ;;  %v402_v18 = vld [vmem:[%s902_s3 + $0x58] sm:$0xff] }
  0x17   : > { %v312_v2 = vpack.c.b16 %v308_v1, %v308_v1  ;;  %s248_s25 = scalar_lea.vmem %s899_s0, %s552_s14  ;;  %v401_v19 = vld [vmem:[%s902_s3 + $0x50] sm:$0xff]  ;;  %v400_v20 = vld [vmem:[%s902_s3 + $0x48] sm:$0xff]  ;;  %v624_v23 = vld [vmem:[%s901_s2] ss:$0 sm:$0xff] }
  0x18   : > { %v553_v7 = vld [vmem:[%s248_s25] sm:$0xff]  ;;  %v554_v8 = vld [vmem:[%s248_s25 + $0x8] sm:$0xff]  ;;  %v556_v9 = vld [vmem:[%s248_s25 + $0x18] sm:$0xff]  ;;  %409 = vmatpush.msra.mxu1 %v405_v13 }
  0x19   : > { %v331_v3 = vsel %vm329_vm0, %v312_v2, 0  ;;  %v555_v10 = vld [vmem:[%s248_s25 + $0x10] sm:$0xff]  ;;  %v399_v24 = vld [vmem:[%s902_s3 + $0x40] sm:$0xff]  ;;  %v398_v27 = vld [vmem:[%s902_s3 + $0x38] sm:$0xff]  ;;  %s639_s25 = sshra.s32 %s443_s17, 4  ;;  %s640_s25 = int_to_ptr.hbm [resolvable:$true] %s639_s25 }
  0x1a   : > { %337 = vmatpush.bf16.msra.mxu0 %v331_v3  ;;  %560 = vmatpush.bf16.msra.mxu2 %v331_v3  ;;  %v397_v28 = vld [vmem:[%s902_s3 + $0x30] sm:$0xff]  ;;  %v396_v32 = vld [vmem:[%s902_s3 + $0x28] sm:$0xff]  ;;  %v395_v36 = vld [vmem:[%s902_s3 + $0x20] sm:$0xff]  ;;  %s641_s27 = scalar_lea.hbm %s640_s25, 1  ;;  %p646_p1 = scmp.lt.s32.totalorder %s640_s25, %s904_s5 }
  0x1b   : > { %561 = vmatpush.bf16.msra.mxu3 %v331_v3  ;;  %410 = vmatpush.msra.mxu1 %v404_v15  ;;  %v394_v37 = vld [vmem:[%s902_s3 + $0x18] sm:$0xff]  ;;  %v393_v40 = vld [vmem:[%s902_s3 + $0x10] sm:$0xff]  ;;  %v392_v43 = vld [vmem:[%s902_s3 + $0x8] sm:$0xff]  ;;  %p642_p12 = scmp.ne.s32.totalorder %s640_s25, %s641_s27  ;;  %p647_p2 = scmp.lt.s32.totalorder %s645_s7, %s641_s27 }
  0x1c   : > { %v391_v46 = vld [vmem:[%s902_s3] sm:$0xff] }
  0x1d   : > { %411 = vmatpush.msra.mxu1 %v403_v17  ;;  %v370_v1 = vld [vmem:[#allocation2] sm:$0x1]  ;;  %p643_p13 = pnand %p642_p12, %p776_p4  ;;  %p648_p3 = por %p647_p2, %p646_p1 }
  0x1e   : > { %338 = vmatpush.bf16.msra.mxu0 %v559_v4  ;;  %562 = vmatpush.bf16.msra.mxu2 %v559_v4 }
  0x1f   : > { %563 = vmatpush.bf16.msra.mxu3 %v559_v4  ;;  %412 = vmatpush.msra.mxu1 %v402_v18  ;;  %p644_p0 = pneg %p643_p13 }
  0x21   : > { %413 = vmatpush.msra.mxu1 %v401_v19  ;;  %p649_p5 = pnand %p648_p3, %p644_p0 }
  0x22   : > { %339 = vmatpush.bf16.msra.mxu0 %v558_v5  ;;  %564 = vmatpush.bf16.msra.mxu2 %v558_v5 }
  0x23   : > { %565 = vmatpush.bf16.msra.mxu3 %v558_v5  ;;  %414 = vmatpush.msra.mxu1 %v400_v20 }
  0x25   : > { %415 = vmatpush.msra.mxu1 %v399_v24 }
  0x26   : > { %340 = vmatpush.bf16.msra.mxu0 %v557_v6  ;;  %566 = vmatpush.bf16.msra.mxu2 %v557_v6 }
  0x27   : > { %567 = vmatpush.bf16.msra.mxu3 %v557_v6  ;;  %416 = vmatpush.msra.mxu1 %v398_v27  ;;  %v407_v6 = vld [vmem:[%s903_s4] sm:$0x1] }
  0x29   : > { %546 = vmatmul.msk.bf16.vlgmr.msra.gmra.mxu0 %vm316_vm1, %v553_v7  ;;  %547 = vmatmul.msk.bf16.vlgmr.msra.gmra.mxu2 %vm316_vm1, %v554_v8 }
  0x2a   : > { %549 = vmatmul.msk.bf16.vlgmr.msra.gmra.mxu3 %vm316_vm1, %v556_v9  ;;  %417 = vmatpush.msra.mxu1 %v397_v28 }
  0x2c   : > { %418 = vmatpush.msra.mxu1 %v396_v32 }
  0x2e   : > { %419 = vmatpush.msra.mxu1 %v395_v36 }
  0x30   : > { %420 = vmatpush.msra.mxu1 %v394_v37 }
  0x32   : > { %421 = vmatpush.msra.mxu1 %v393_v40 }
  0x34   : > { %422 = vmatpush.msra.mxu1 %v392_v43 }
  0x36   : > { %423 = vmatpush.msra.mxu1 %v391_v46 }
  0x39   : > { %548 = vmatmul.msk.bf16.gmra.mxu2 %vm316_vm1, %v555_v10 }
  0xa6   : > { %v342_v14 = vpop.f32.mrf.mxu0 }
  0xa7   : > { %v343_v25 = vadd.f32 %v624_v23, %v342_v14 }
  0xa9   : > { %v362_v30 = vmax.f32 %v343_v25, 0.0 }
  0xac   : > { %v347_v16 = vpop.f32.mrf.mxu2 }
  0xad   : > { %v357_v29 = vpop.f32.mrf.mxu3  ;;  %v348_v34 = vadd.f32 %v624_v23, %v347_v16 }
  0xae   : > { %v344_v21 = vpop.f32.mrf.mxu0  ;;  %v358_v50 = vadd.f32 %v624_v23, %v357_v29 }
  0xaf   : > { %v345_v26 = vadd.f32 %v624_v23, %v344_v21  ;;  %v364_v41 = vmax.f32 %v348_v34, 0.0 }
  0xb0   : > { %v368_v55 = vmax.f32 %v358_v50, 0.0 }
  0xb1   : > { %v363_v31 = vmax.f32 %v345_v26, 0.0 }
  0xb3   : > { %v371_v38 = vadd.f32 %v363_v31, %v362_v30 }
  0xb4   : > { %v349_v22 = vpop.f32.mrf.mxu2 }
  0xb5   : > { %v350_v35 = vadd.f32 %v624_v23, %v349_v22  ;;  %v372_v44 = vadd.f32 %v371_v38, %v364_v41  ;;  %v359_v47 = vpop.f32.mrf.mxu3 }
  0xb6   : > { %v360_v53 = vadd.f32 %v624_v23, %v359_v47 }
  0xb7   : > { %v365_v42 = vmax.f32 %v350_v35, 0.0 }
  0xb8   : > { %v369_v57 = vmax.f32 %v360_v53, 0.0 }
  0xb9   : > { %v373_v49 = vadd.f32 %v372_v44, %v365_v42 }
  0xbc   : > { %v352_v33 = vpop.f32.mrf.mxu2 }
  0xbd   : > { %v353_v39 = vadd.f32 %v624_v23, %v352_v33 }
  0xbf   : > { %v366_v45 = vmax.f32 %v353_v39, 0.0 }
  0xc1   : > { %v374_v52 = vadd.f32 %v373_v49, %v366_v45 }
  0xc4   : > { %v354_v48 = vpop.f32.mrf.mxu2 }
  0xc5   : > { %v355_v51 = vadd.f32 %v624_v23, %v354_v48 }
  0xc7   : > { %v367_v54 = vmax.f32 %v355_v51, 0.0 }
  0xc9   : > { %v375_v56 = vadd.f32 %v374_v52, %v367_v54 }
  0xcb   : > { %v376_v58 = vadd.f32 %v375_v56, %v368_v55 }
  0xcd   : > { %v377_v59 = vadd.f32 %v376_v58, %v369_v57 }
  0xcf   : > { %v378_v60 = vrot.slane %v377_v59, 4 }
  0xd1   : > { %v379_v61 = vadd.f32 %v378_v60, %v377_v59 }
  0xd3   : > { %v380_v62 = vrot.slane %v379_v61, 2 }
  0xd5   : > { %v381_v63 = vadd.f32 %v380_v62, %v379_v61 }
  0xd7   : > { %v382_v0 = vrot.slane %v381_v63, 1 }
  0xd9   : > { %v383_v2 = vadd.f32 %v382_v0, %v381_v63 }
  0xdb   : > { %v384_v3 = vadd.f32 %v383_v2, %v370_v1 }
  0xdd   : > { %385 = vst [vmem:[#allocation2] sm:$0x1] %v384_v3 }
  0xe4   : > { %v389_v4 = vld [vmem:[#allocation2] sm:$0x1] }
  0xe5   : > { %v390_v5 = vmul.f32 0.015625, %v389_v4 }
  0xe7   : > { %424 = vmatmul.f32.vlgmr.msra.gmra.mxu1 %v390_v5 }
 0x164   : > { %v425_v7 = vpop.f32.mrf.mxu1 }
 0x165   : > { %v426_v8 = vadd.f32 %v425_v7, %v407_v6 }
 0x167   : > { %428 = vst [vmem:[%s239_s15] sm:$0x1] %v426_v8 }
 0x168   : > { %652 = shalt.err (!%p649_p5)
}
 0x169   : > { %568 = dma.vmem_to_hbm [thread:$0]  (%p776_p4), %s441_s16, 16, %s443_s17, %s430_s24  }
 0x16a PF: > { %p574_p6 = scmp.ge.s32.totalorder %s703_s23, 2  ;;  %s454_s9 = sand.u32 1, %s683_s18  }
 0x16b   : > { %s455_s11 = scalar_lea.sflag [#allocation4], %s454_s9 }
 0x16c   : > { %p571_p7 = pnand %p574_p6, %p783_p8 }
 0x16e   : > { %p572_p9 = pneg %p571_p7 }
 0x170   : > { %678 = dma.done.wait (%p572_p9), %s455_s11, 16  }
 0x171   : > { %680 = vsyncadd (%p572_p9), %s455_s11, 4294967280  ;;  %s18_s23 = sadd.s32 1, %s703_s23   ;;  %s907_s18 = smov %s687_s19 }
 0x172   : > { %p15_p10 = scmp.ge.s32.totalorder %s18_s23, 4   ;;  %s908_s19 = smov %s691_s20 }
 0x173   : > { %s909_s20 = smov %s789_s6  ;;  %s910_s21 = smov %s699_s22 }
 0x174   : > { %s911_s22 = smov %s913_s26  ;;  %17 = sbr.rel (!%p15_p10) target bundleno = 4 (0x4), region = 83 }
 0x179   :  { %460 = vsyncpa [#allocation4], 1 }
 0x17a   :  { %462 = vsyncpa [#allocation4 + $0x1], 1 }

</bundles_post_ra>
